<compile_context>
chip_gen: v7x
topology: tpu7x:2x2x1
jax: 0.10.0
libtpu: 0.0.40
codegen_flags: <defaults>
</compile_context>

<pallas_src>
import jax
import jax.numpy as jnp
from jax.experimental import pallas as pl
from jax.experimental.pallas import tpu as pltpu


def _round_up(x, m):
    return ((x + m - 1) // m) * m


def deletion_kernel(x_ref, m_ref, w_ref, o_ref):
    # x_ref: (tm, dim_p)   full (padded) feature dim -> contraction axis
    # m_ref: (tm, 1)       int32, nonzero where row is "deleted"
    # w_ref: (dim_p, tn)   column tile of W
    # o_ref: (tm, tn)
    tn = o_ref.shape[-1]
    j = pl.program_id(1)

    x = x_ref[...]
    y = jnp.dot(x, w_ref[...], preferred_element_type=jnp.float32)

    # Pass-through columns of x matching this output column tile.
    col = pl.multiple_of(j * tn, 128)
    x_cols = x_ref[:, pl.ds(col, tn)].astype(jnp.float32)

    keep_deleted = m_ref[...] != 0                       # (tm, 1) bool, broadcasts
    o_ref[...] = jnp.where(keep_deleted, y, x_cols).astype(o_ref.dtype)


def deletion_layer(x, mask_bool, deletion_weight, *, tm_target=512, tn_target=512):
    """x: [N, dim] f32, mask_bool: [N] bool, deletion_weight: [dim, dim] f32."""
    N, dim = x.shape
    assert deletion_weight.shape == (dim, dim)

    # ---- lane-dense padding of the feature dim (multiple of 128 lanes) ----
    dim_p = max(128, _round_up(dim, 128))

    # ---- row tile: large, multiple of 8 sublanes, capped at the row count ----
    tm = min(tm_target, _round_up(N, 8))
    tm = _round_up(tm, 8)
    n_pad = _round_up(N, tm)

    # ---- column tile of W (multiple of 128, must divide dim_p) ----
    if dim_p <= tn_target:
        tn = dim_p
    elif dim_p % tn_target == 0:
        tn = tn_target
    else:
        tn = 128  # always divides dim_p

    # ---- zero-pad inputs (padded rows get mask=0 -> pure pass-through) ----
    x_p = jnp.zeros((n_pad, dim_p), dtype=x.dtype).at[:N, :dim].set(x)
    w_p = jnp.zeros((dim_p, dim_p), dtype=deletion_weight.dtype).at[:dim, :dim].set(
        deletion_weight
    )
    m_p = (
        jnp.zeros((n_pad, 1), dtype=jnp.int32)
        .at[:N, 0]
        .set(mask_bool.astype(jnp.int32))
    )

    grid = (n_pad // tm, dim_p // tn)  # rows outer, W-columns inner

    out_p = pl.pallas_call(
        deletion_kernel,
        out_shape=jax.ShapeDtypeStruct((n_pad, dim_p), x.dtype),
        grid_spec=pltpu.PrefetchScalarGridSpec(
            num_scalar_prefetch=0,
            grid=grid,
            in_specs=[
                pl.BlockSpec((tm, dim_p), lambda i, j: (i, 0)),   # x (resident over j)
                pl.BlockSpec((tm, 1), lambda i, j: (i, 0)),       # mask
                pl.BlockSpec((dim_p, tn), lambda i, j: (0, j)),   # W column tile
            ],
            out_specs=pl.BlockSpec((tm, tn), lambda i, j: (i, j)),
        ),
        compiler_params=pltpu.CompilerParams(
            dimension_semantics=("parallel", "arbitrary"),
            vmem_limit_bytes=48 << 20,   # safe on v5e/v6e (128 MiB) and v7x (64 MiB)
        ),
    )(x_p, m_p, w_p)

    return out_p[:N, :dim]


def _ref(x, mask_bool, w):
    return jnp.where(mask_bool[:, None], x @ w, x)


if __name__ == "__main__":
    key = jax.random.PRNGKey(0)
    kx, km, kx2, km2 = jax.random.split(key, 4)

    # Small shapes consistent with the module's forward (rows x feature dim).
    N, dim = 16, 32
    x = jax.random.normal(kx, (N, dim), dtype=jnp.float32)
    mask = jax.random.bernoulli(km, p=0.5, shape=(N,))          # bool per-row mask
    # nn.Parameter(torch.ones(dim, dim) / 1000)
    w = jnp.ones((dim, dim), dtype=jnp.float32) / 1000.0

    out = jax.block_until_ready(deletion_layer(x, mask, w))
    assert out.shape == x.shape and out.dtype == x.dtype
    assert jnp.allclose(out, _ref(x, mask, w), atol=1e-5, rtol=1e-5)

    # Second sanity check exercising multi-step grid, padding and column tiling.
    N2, dim2 = 1024, 256
    x2 = jax.random.normal(kx2, (N2, dim2), dtype=jnp.float32)
    mask2 = jax.random.bernoulli(km2, p=0.3, shape=(N2,))
    w2 = jnp.ones((dim2, dim2), dtype=jnp.float32) / 1000.0
    out2 = jax.block_until_ready(deletion_layer(x2, mask2, w2))
    assert jnp.allclose(out2, _ref(x2, mask2, w2), atol=1e-4, rtol=1e-4)

    print("KERNEL_OK")
</pallas_src>

<mosaic_0001>
module attributes {stable_mosaic.version = 11 : i64} {
  func.func @deletion_kernel(%arg0: i32, %arg1: i32, %arg2: memref<16x128xf32, #tpu.memory_space<vmem>>, %arg3: memref<16x1xi32, #tpu.memory_space<vmem>>, %arg4: memref<128x128xf32, #tpu.memory_space<vmem>>, %arg5: memref<16x128xf32, #tpu.memory_space<vmem>>) attributes {dimension_semantics = [#tpu.dimension_semantics<parallel>, #tpu.dimension_semantics<arbitrary>], iteration_bounds = array<i64: 1, 1>, scalar_prefetch = 0 : i64, scratch_operands = 0 : i64, tpu.core_type = #tpu.core_type<tc>, window_params = [{transform_indices = @transform_0, window_bounds = array<i64: 16, 128>}, {transform_indices = @transform_1, window_bounds = array<i64: 16, 1>}, {transform_indices = @transform_2, window_bounds = array<i64: 128, 128>}, {transform_indices = @transform_3, window_bounds = array<i64: 16, 128>}]} {
    %c0 = arith.constant 0 : index
    %c0_0 = arith.constant 0 : index
    %0 = vector.load %arg2[%c0, %c0_0] : memref<16x128xf32, #tpu.memory_space<vmem>>, vector<16x128xf32>
    %c0_1 = arith.constant 0 : index
    %c0_2 = arith.constant 0 : index
    %1 = vector.load %arg4[%c0_1, %c0_2] : memref<128x128xf32, #tpu.memory_space<vmem>>, vector<128x128xf32>
    %cst = arith.constant dense<0.000000e+00> : vector<16x128xf32>
    %2 = tpu.matmul %0, %1, %cst {dimension_numbers = #tpu.dot_dimension_numbers<[1], [0], [0], [1], [0, 0, 1, 1], [], []>} : vector<16x128xf32>, vector<128x128xf32>, vector<16x128xf32> -> vector<16x128xf32>
    %c128_i32 = arith.constant 128 : i32
    %3 = arith.muli %arg1, %c128_i32 : i32
    %4 = tpu.assume_multiple %3, 128 : i32
    %c0_3 = arith.constant 0 : index
    %5 = arith.index_cast %4 : i32 to index
    %6 = vector.load %arg2[%c0_3, %5] : memref<16x128xf32, #tpu.memory_space<vmem>>, vector<16x128xf32>
    %c0_4 = arith.constant 0 : index
    %c0_5 = arith.constant 0 : index
    %7 = vector.load %arg3[%c0_4, %c0_5] : memref<16x1xi32, #tpu.memory_space<vmem>>, vector<16x1xi32>
    %c0_i32 = arith.constant 0 : i32
    %8 = vector.broadcast %c0_i32 : i32 to vector<16x1xi32>
    %9 = arith.cmpi ne, %7, %8 : vector<16x1xi32>
    %10 = vector.shape_cast %9 : vector<16x1xi1> to vector<16x1xi1>
    %11 = vector.broadcast %10 : vector<16x1xi1> to vector<16x128xi1>
    %12 = arith.select %11, %2, %6 : vector<16x128xi1>, vector<16x128xf32>
    %c0_6 = arith.constant 0 : index
    %c0_7 = arith.constant 0 : index
    %13 = vector.load %arg5[%c0_6, %c0_7] : memref<16x128xf32, #tpu.memory_space<vmem>>, vector<16x128xf32>
    tpu.vector_store %arg5[%c0_6, %c0_7], %12 {strides = array<i32>} : memref<16x128xf32, #tpu.memory_space<vmem>>, vector<16x128xf32>,
    return
  }
  func.func @transform_0(%arg0: i32, %arg1: i32) -> (i32, i32) {
    %c0_i32 = arith.constant 0 : i32
    %c0_i32_0 = arith.constant 0 : i32
    return %arg0, %c0_i32 : i32, i32
  }
  func.func @transform_1(%arg0: i32, %arg1: i32) -> (i32, i32) {
    %c0_i32 = arith.constant 0 : i32
    %c0_i32_0 = arith.constant 0 : i32
    return %arg0, %c0_i32 : i32, i32
  }
  func.func @transform_2(%arg0: i32, %arg1: i32) -> (i32, i32) {
    %c0_i32 = arith.constant 0 : i32
    %c0_i32_0 = arith.constant 0 : i32
    return %c0_i32, %arg1 : i32, i32
  }
  func.func @transform_3(%arg0: i32, %arg1: i32) -> (i32, i32) {
    %c0_i32 = arith.constant 0 : i32
    return %arg0, %arg1 : i32, i32
  }
}

</mosaic_0001>

<bundles_post_ra>
// kernel: tpu_custom_call.1
= control target key start
LH: loop header
LB: loop body
LE: loop exit
PB: predicated region body
PF: predicated region fallthrough
CT: control target
= control target key end

     0   :  { %8 = vsyncpa [#allocation3], 0  ;;  %s370_s0 = inlined_call_operand.vmem [shape: f32[16,128], index: 0, kind: input, shape index: {}]   ;;  %s371_s1 = inlined_call_operand.vmem [shape: s32[16,1], index: 1, kind: input, shape index: {}]   ;;  %s372_s2 = inlined_call_operand.hbm [shape: f32[128,128], index: 2, kind: input, shape index: {}]   ;;  %s373_s3 = inlined_call_operand.hbm [shape: f32[16,128], index: 3, kind: output, shape index: {}]  }
   0x1   :  { %9 = vsyncpa [#allocation4], 0  ;;  %s303_s12 = smov [#allocation2]   ;;  %s255_s16 = scalar_lea.hbm %s372_s2, 2048 }
   0x2   :  { %s19_s13 = sshll.u32 %s303_s12, 4  ;;  %p256_p0 = scmp.ne.s32.totalorder %s372_s2, %s255_s16  ;;  %s20_s13 = int_to_ptr.vmem [resolvable:$true] %s19_s13 }
   0x3   :  { %p259_p1 = scmp.lt.u32.totalorder %s255_s16, %s372_s2 }
   0x5   :  { %p261_p2 = pnand %p259_p1, %p256_p0 }
   0x7   :  { %264 = shalt.err (!%p261_p2)
}
   0x8   :  { %s265_s21 = scalar_lea.vmem %s20_s13, 2048  ;;  %p270_p4 = scmp.lt.s32.totalorder %s20_s13, %s20_s13 }
   0x9   :  { %p266_p3 = scmp.ne.s32.totalorder %s20_s13, %s265_s21  ;;  %p271_p5 = scmp.lt.s32.totalorder %s265_s21, %s265_s21 }
   0xb   :  { %p272_p6 = por %p271_p5, %p270_p4 }
   0xd   :  { %p273_p7 = pnand %p272_p6, %p266_p3 }
   0xf   :  { %276 = shalt.err (!%p273_p7)
}
  0x10   :  { %s304_s22 = smov 128   ;;  %s305_s23 = smov 8  }
  0x11   :  { %25 = dma.hbm_to_vmem [thread:$0]  %s372_s2, 2048, %s20_s13, [#allocation3], %s304_s22, %s304_s22, %s305_s23  }
  0x12   :  { %299 = dma.done.wait [#allocation3], 2048  }
  0x13   :  { %300 = vsyncadd [#allocation3], 4294965248  ;;  %v306_v0 = vmov 0   ;;  %v31_v1 = vld [vmem:[#allocation2] sm:$0xff]  ;;  %v32_v2 = vld [vmem:[#allocation2 + $0x8] sm:$0xff]  ;;  %s307_s5 = smov [#allocation5]  }
  0x14   :  { %254 = vset.pattern.permute.xlu0 %v306_v0  ;;  %v33_v3 = vld [vmem:[#allocation2 + $0x10] sm:$0xff]  ;;  %v217_v4 = vpack.c.bf16 %v32_v2, %v31_v1  ;;  %v34_v5 = vld [vmem:[#allocation2 + $0x18] sm:$0xff]  ;;  %v35_v7 = vld [vmem:[#allocation2 + $0x20] sm:$0xff]  ;;  %s151_s6 = sshll.u32 %s307_s5, 4  ;;  %s152_s6 = int_to_ptr.vmem [resolvable:$true] %s151_s6 }
  0x15   :  { %v221_v6 = vpack.c.bf16 %v34_v5, %v33_v3  ;;  %v36_v8 = vld [vmem:[#allocation2 + $0x28] sm:$0xff]  ;;  %v37_v10 = vld [vmem:[#allocation2 + $0x30] sm:$0xff]  ;;  %v29_v11 = vld [vmem:[%s370_s0] sm:$0xff]  ;;  %s277_s7 = scalar_lea.vmem %s152_s6, 256  ;;  %p282_p9 = scmp.lt.s32.totalorder %s152_s6, %s152_s6 }
  0x16   :  { %218 = vmatprep.subr.bf16.mxu0 %v217_v4  ;;  %v225_v9 = vpack.c.bf16 %v36_v8, %v35_v7  ;;  %v38_v12 = vld [vmem:[#allocation2 + $0x38] sm:$0xff]  ;;  %214 = vmatprep.mubr.f32.mxu0 %v29_v11  ;;  %v128_v13 = vld [vmem:[%s371_s1] sm:$0xff]  ;;  %v129_v14 = vld [vmem:[%s371_s1 + $0x8] sm:$0xff]  ;;  %p278_p8 = scmp.ne.s32.totalorder %s152_s6, %s277_s7  ;;  %p283_p10 = scmp.lt.s32.totalorder %s277_s7, %s277_s7 }
  0x17   :  { %220 = vmatpush3.bf16.msra.mxu0 %v217_v4  ;;  %vm130_vm0 = vcmp.ne.s32.totalorder %v128_v13, 0  ;;  %vm131_vm1 = vcmp.ne.s32.totalorder %v129_v14, 0  ;;  %v229_v16 = vpack.c.bf16 %v38_v12, %v37_v10  ;;  %v39_v17 = vld [vmem:[#allocation2 + $0x40] sm:$0xff]  ;;  %v40_v18 = vld [vmem:[#allocation2 + $0x48] sm:$0xff]  ;;  %v41_v21 = vld [vmem:[#allocation2 + $0x50] sm:$0xff] }
  0x18   :  { %222 = vmatprep.subr.bf16.mxu0 %v221_v6  ;;  %v132_v15 = vsel %vm130_vm0, 1, %v306_v0  ;;  %v133_v19 = vsel %vm131_vm1, 1, %v306_v0  ;;  %v233_v20 = vpack.c.bf16 %v40_v18, %v39_v17  ;;  %v42_v22 = vld [vmem:[#allocation2 + $0x58] sm:$0xff]  ;;  %v43_v24 = vld [vmem:[#allocation2 + $0x60] sm:$0xff]  ;;  %v44_v25 = vld [vmem:[#allocation2 + $0x68] sm:$0xff]  ;;  %p284_p11 = por %p283_p10, %p282_p9 }
  0x19   :  { %135 = vperm.xlu0 %254, %v132_v15   ;;  %v237_v23 = vpack.c.bf16 %v42_v22, %v41_v21  ;;  %v241_v26 = vpack.c.bf16 %v44_v25, %v43_v24  ;;  %v45_v27 = vld [vmem:[#allocation2 + $0x70] sm:$0xff]  ;;  %v46_v28 = vld [vmem:[#allocation2 + $0x78] sm:$0xff]  ;;  %v30_v30 = vld [vmem:[%s370_s0 + $0x8] sm:$0xff] }
  0x1a   :  { %v245_v29 = vpack.c.bf16 %v46_v28, %v45_v27  ;;  %p285_p12 = pnand %p284_p11, %p278_p8 }
  0x1b   :  { %224 = vmatpush3.bf16.msra.mxu0 %v221_v6 }
  0x1c   :  { %226 = vmatprep.subr.bf16.mxu0 %v225_v9 }
  0x1d   :  { %138 = vperm.xlu0 %254, %v133_v19  }
  0x1f   :  { %228 = vmatpush3.bf16.msra.mxu0 %v225_v9 }
  0x20   :  { %230 = vmatprep.subr.bf16.mxu0 %v229_v16 }
  0x23   :  { %232 = vmatpush3.bf16.msra.mxu0 %v229_v16 }
  0x24   :  { %234 = vmatprep.subr.bf16.mxu0 %v233_v20 }
  0x27   :  { %236 = vmatpush3.bf16.msra.mxu0 %v233_v20 }
  0x28   :  { %238 = vmatprep.subr.bf16.mxu0 %v237_v23 }
  0x2b   :  { %240 = vmatpush3.bf16.msra.mxu0 %v237_v23 }
  0x2c   :  { %242 = vmatprep.subr.bf16.mxu0 %v241_v26 }
  0x2f   :  { %244 = vmatpush3.bf16.msra.mxu0 %v241_v26 }
  0x30   :  { %246 = vmatprep.subr.bf16.mxu0 %v245_v29 }
  0x33   :  { %248 = vmatpush3.bf16.msra.mxu0 %v245_v29 }
  0x36   :  { %215 = vmatmul.mubr.f32.vlgmr.msra.gmra.mrb[0].mxu0 %v30_v30 }
  0x98   :  { %v136_v31 = vpop.permute.xlu0 %135 }
  0x99   :  { %vm140_vm3 = vcmp.eq.s32.totalorder %v136_v31, 1 }
  0x9c   :  { %v139_v32 = vpop.permute.xlu0 %138 }
  0x9d   :  { %vm141_vm2 = vcmp.eq.s32.totalorder %v139_v32, 1 }
 0x109   :  { %v216_v33 = vpop.f32.mrb[0].mxu0 }
 0x10a   :  { %v143_v34 = vsel %vm141_vm2, %v216_v33, %v30_v30  ;;  %v113_v35 = vpop.f32.mrb[1].mxu0 }
 0x10b   :  { %145 = vst [vmem:[#allocation5 + $0x8] sm:$0xff] %v143_v34  ;;  %v142_v36 = vsel %vm140_vm3, %v113_v35, %v29_v11 }
 0x10c   :  { %144 = vst [vmem:[#allocation5] sm:$0xff] %v142_v36 }
 0x10d   :  { %288 = shalt.err (!%p285_p12)
}
 0x10e   :  { %s289_s9 = scalar_lea.hbm %s373_s3, 256 }
 0x10f   :  { %p290_p13 = scmp.ne.s32.totalorder %s373_s3, %s289_s9  ;;  %p293_p0 = scmp.lt.u32.totalorder %s289_s9, %s373_s3 }
 0x111   :  { %p295_p1 = pnand %p293_p0, %p290_p13 }
 0x113   :  { %298 = shalt.err (!%p295_p1)
}
 0x114   :  { %157 = dma.vmem_to_hbm [thread:$0]  %s152_s6, 256, %s373_s3, [#allocation4], %s304_s22, %s304_s22, %s305_s23  }
 0x115   :  { %301 = dma.done.wait [#allocation4], 256  }
 0x116   :  { %302 = vsyncadd [#allocation4], 4294967040 }
 0x117   :  { %161 = vsyncpa [#allocation3], 1 }
 0x118   :  { %162 = vsyncpa [#allocation4], 1 }

</bundles_post_ra>
